<compile_context>
chip_gen: v5e
topology: v5e:2x2
jax: 0.10.0
libtpu: 0.0.40
codegen_flags: <defaults>
</compile_context>

<pallas_src>
import functools

import jax
import jax.numpy as jnp
from jax.experimental import pallas as pl
from jax.experimental.pallas import tpu as pltpu


def _round_up(x, m):
    return ((x + m - 1) // m) * m


def node_classifier_kernel(x_ref, w1_ref, b1_ref, w2_ref, b2_ref, o_ref):
    # l1: x @ W1 (bf16 in, f32 accumulate) + b1
    h = jnp.dot(x_ref[...], w1_ref[...], preferred_element_type=jnp.float32)
    h = h + b1_ref[...]                       # (TM, Hp) + (1, Hp) broadcast, f32
    # LeakyReLU (PyTorch default negative_slope = 0.01), f32 elementwise
    h = jnp.where(h > 0, h, 0.01 * h)
    # logits: h (bf16) @ W2 (bf16), f32 accumulate, + b2
    out = jnp.dot(h.astype(jnp.bfloat16), w2_ref[...],
                  preferred_element_type=jnp.float32)
    o_ref[...] = (out + b2_ref[...]).astype(o_ref.dtype)


@functools.partial(jax.jit, static_argnames=("tile_m",))
def node_classifier_forward(x, w1, b1, w2, b2, *, tile_m=256):
    """x: (N, D) f32; w1: (D, H); b1: (1, H) or (H,); w2: (H, C); b2: (1, C) or (C,)."""
    N, D = x.shape
    H = w1.shape[1]
    C = w2.shape[1]

    # Lane-align the hidden and class dims; tile the node dim.
    Hp = _round_up(H, 128)
    Cp = _round_up(C, 128)
    TM = min(tile_m, _round_up(N, 8))
    Np = _round_up(N, TM)

    # Zero-padded, bf16 MXU operands (padding MUST be zero so the extra K
    # lanes of the second matmul contribute nothing).
    xp = jnp.zeros((Np, D), jnp.bfloat16).at[:N, :].set(x.astype(jnp.bfloat16))
    w1p = jnp.zeros((D, Hp), jnp.bfloat16).at[:, :H].set(w1.astype(jnp.bfloat16))
    w2p = jnp.zeros((Hp, Cp), jnp.bfloat16).at[:H, :C].set(w2.astype(jnp.bfloat16))
    b1p = jnp.zeros((1, Hp), jnp.float32).at[:, :H].set(
        b1.reshape(1, H).astype(jnp.float32))
    b2p = jnp.zeros((1, Cp), jnp.float32).at[:, :C].set(
        b2.reshape(1, C).astype(jnp.float32))

    grid = (Np // TM,)

    cost = pl.CostEstimate(
        flops=2 * Np * D * Hp + 2 * Np * Hp * Cp,
        transcendentals=0,
        bytes_accessed=(Np * D * 2 + D * Hp * 2 + Hp * Cp * 2
                        + Hp * 4 + Cp * 4 + Np * Cp * 4),
    )

    out = pl.pallas_call(
        node_classifier_kernel,
        out_shape=jax.ShapeDtypeStruct((Np, Cp), jnp.float32),
        grid_spec=pltpu.PrefetchScalarGridSpec(
            num_scalar_prefetch=0,
            grid=grid,
            in_specs=[
                pl.BlockSpec((TM, D), lambda i: (i, 0)),   # x tile (pipelined)
                pl.BlockSpec((D, Hp), lambda i: (0, 0)),   # W1 resident
                pl.BlockSpec((1, Hp), lambda i: (0, 0)),   # b1 resident
                pl.BlockSpec((Hp, Cp), lambda i: (0, 0)),  # W2 resident
                pl.BlockSpec((1, Cp), lambda i: (0, 0)),   # b2 resident
            ],
            out_specs=pl.BlockSpec((TM, Cp), lambda i: (i, 0)),
        ),
        compiler_params=pltpu.CompilerParams(
            dimension_semantics=("parallel",),   # shard row tiles on v7x megacore
            vmem_limit_bytes=48 * 1024 * 1024,   # headroom under v7x's 64 MiB VMEM
        ),
        cost_estimate=cost,
    )(xp, w1p, b1p, w2p, b2p)

    # Slice padded rows / lanes back off.
    return out[:N, :C]


def init_params(key, input_dims, num_classes, hidden=100):
    # Deterministic synthetic init (PyTorch-Linear-style uniform bounds).
    k1, k2, k3, k4 = jax.random.split(key, 4)
    bound1 = 1.0 / jnp.sqrt(input_dims)
    w1 = jax.random.uniform(k1, (input_dims, hidden), jnp.float32, -bound1, bound1)
    b1 = jax.random.uniform(k2, (1, hidden), jnp.float32, -bound1, bound1)
    bound2 = 1.0 / jnp.sqrt(hidden)
    w2 = jax.random.uniform(k3, (hidden, num_classes), jnp.float32, -bound2, bound2)
    b2 = jax.random.uniform(k4, (1, num_classes), jnp.float32, -bound2, bound2)
    return w1, b1, w2, b2


if __name__ == "__main__":
    key = jax.random.PRNGKey(0)
    k_x, k_p = jax.random.split(key)

    N, D, H, C = 8, 32, 100, 10          # batch, input_dims, hidden, num_classes
    x = jax.random.normal(k_x, (N, D), jnp.float32)
    w1, b1, w2, b2 = init_params(k_p, D, C, hidden=H)

    out = node_classifier_forward(x, w1, b1, w2, b2)
    jax.block_until_ready(out)

    # Pure-JAX f32 reference (kernel uses bf16 MXU inputs -> loose tolerance).
    ref_h = x @ w1 + b1
    ref_h = jnp.where(ref_h > 0, ref_h, 0.01 * ref_h)
    ref = ref_h @ w2 + b2
    assert out.shape == (N, C)
    assert jnp.allclose(out, ref, atol=5e-2, rtol=5e-2), (
        float(jnp.max(jnp.abs(out - ref))))

    print("KERNEL_OK")
</pallas_src>

<mosaic_0001>
module attributes {stable_mosaic.version = 11 : i64} {
  func.func @node_classifier_kernel(%arg0: i32, %arg1: memref<8x32xbf16, #tpu.memory_space<vmem>>, %arg2: memref<32x128xbf16, #tpu.memory_space<vmem>>, %arg3: memref<1x128xf32, #tpu.memory_space<vmem>>, %arg4: memref<128x128xbf16, #tpu.memory_space<vmem>>, %arg5: memref<1x128xf32, #tpu.memory_space<vmem>>, %arg6: memref<8x128xf32, #tpu.memory_space<vmem>>) attributes {dimension_semantics = [#tpu.dimension_semantics<parallel>], iteration_bounds = array<i64: 1>, scalar_prefetch = 0 : i64, scratch_operands = 0 : i64, tpu.core_type = #tpu.core_type<tc>, window_params = [{transform_indices = @transform_0, window_bounds = array<i64: 8, 32>}, {pipeline_mode = #tpu.pipeline_mode<synchronous>, transform_indices = @transform_1, window_bounds = array<i64: 32, 128>}, {pipeline_mode = #tpu.pipeline_mode<synchronous>, transform_indices = @transform_2, window_bounds = array<i64: 1, 128>}, {pipeline_mode = #tpu.pipeline_mode<synchronous>, transform_indices = @transform_3, window_bounds = array<i64: 128, 128>}, {pipeline_mode = #tpu.pipeline_mode<synchronous>, transform_indices = @transform_4, window_bounds = array<i64: 1, 128>}, {transform_indices = @transform_5, window_bounds = array<i64: 8, 128>}]} {
    %c0 = arith.constant 0 : index
    %c0_0 = arith.constant 0 : index
    %0 = vector.load %arg1[%c0, %c0_0] : memref<8x32xbf16, #tpu.memory_space<vmem>>, vector<8x32xbf16>
    %c0_1 = arith.constant 0 : index
    %c0_2 = arith.constant 0 : index
    %1 = vector.load %arg2[%c0_1, %c0_2] : memref<32x128xbf16, #tpu.memory_space<vmem>>, vector<32x128xbf16>
    %cst = arith.constant dense<0.000000e+00> : vector<8x128xf32>
    %2 = tpu.matmul %0, %1, %cst {dimension_numbers = #tpu.dot_dimension_numbers<[1], [0], [0], [1], [0, 0, 1, 1], [], []>} : vector<8x32xbf16>, vector<32x128xbf16>, vector<8x128xf32> -> vector<8x128xf32>
    %c0_3 = arith.constant 0 : index
    %c0_4 = arith.constant 0 : index
    %3 = vector.load %arg3[%c0_3, %c0_4] : memref<1x128xf32, #tpu.memory_space<vmem>>, vector<1x128xf32>
    %4 = vector.broadcast %3 : vector<1x128xf32> to vector<8x128xf32>
    %5 = arith.addf %2, %4 : vector<8x128xf32>
    %cst_5 = arith.constant 0.000000e+00 : f32
    %6 = vector.broadcast %cst_5 : f32 to vector<8x128xf32>
    %7 = arith.cmpf ogt, %5, %6 : vector<8x128xf32>
    %cst_6 = arith.constant 0.00999999977 : f32
    %8 = vector.broadcast %cst_6 : f32 to vector<8x128xf32>
    %9 = arith.mulf %8, %5 : vector<8x128xf32>
    %10 = arith.select %7, %5, %9 : vector<8x128xi1>, vector<8x128xf32>
    %11 = arith.truncf %10 : vector<8x128xf32> to vector<8x128xbf16>
    %c0_7 = arith.constant 0 : index
    %c0_8 = arith.constant 0 : index
    %12 = vector.load %arg4[%c0_7, %c0_8] : memref<128x128xbf16, #tpu.memory_space<vmem>>, vector<128x128xbf16>
    %cst_9 = arith.constant dense<0.000000e+00> : vector<8x128xf32>
    %13 = tpu.matmul %11, %12, %cst_9 {dimension_numbers = #tpu.dot_dimension_numbers<[1], [0], [0], [1], [0, 0, 1, 1], [], []>} : vector<8x128xbf16>, vector<128x128xbf16>, vector<8x128xf32> -> vector<8x128xf32>
    %c0_10 = arith.constant 0 : index
    %c0_11 = arith.constant 0 : index
    %14 = vector.load %arg5[%c0_10, %c0_11] : memref<1x128xf32, #tpu.memory_space<vmem>>, vector<1x128xf32>
    %15 = vector.broadcast %14 : vector<1x128xf32> to vector<8x128xf32>
    %16 = arith.addf %13, %15 : vector<8x128xf32>
    %c0_12 = arith.constant 0 : index
    %c0_13 = arith.constant 0 : index
    %17 = vector.load %arg6[%c0_12, %c0_13] : memref<8x128xf32, #tpu.memory_space<vmem>>, vector<8x128xf32>
    tpu.vector_store %arg6[%c0_12, %c0_13], %16 {strides = array<i32>} : memref<8x128xf32, #tpu.memory_space<vmem>>, vector<8x128xf32>,
    return
  }
  func.func @transform_0(%arg0: i32) -> (i32, i32) {
    %c0_i32 = arith.constant 0 : i32
    %c0_i32_0 = arith.constant 0 : i32
    return %arg0, %c0_i32 : i32, i32
  }
  func.func @transform_1(%arg0: i32) -> (i32, i32) {
    %c0_i32 = arith.constant 0 : i32
    %c0_i32_0 = arith.constant 0 : i32
    %c0_i32_1 = arith.constant 0 : i32
    return %c0_i32, %c0_i32_0 : i32, i32
  }
  func.func @transform_2(%arg0: i32) -> (i32, i32) {
    %c0_i32 = arith.constant 0 : i32
    %c0_i32_0 = arith.constant 0 : i32
    %c0_i32_1 = arith.constant 0 : i32
    return %c0_i32, %c0_i32_0 : i32, i32
  }
  func.func @transform_3(%arg0: i32) -> (i32, i32) {
    %c0_i32 = arith.constant 0 : i32
    %c0_i32_0 = arith.constant 0 : i32
    %c0_i32_1 = arith.constant 0 : i32
    return %c0_i32, %c0_i32_0 : i32, i32
  }
  func.func @transform_4(%arg0: i32) -> (i32, i32) {
    %c0_i32 = arith.constant 0 : i32
    %c0_i32_0 = arith.constant 0 : i32
    %c0_i32_1 = arith.constant 0 : i32
    return %c0_i32, %c0_i32_0 : i32, i32
  }
  func.func @transform_5(%arg0: i32) -> (i32, i32) {
    %c0_i32 = arith.constant 0 : i32
    %c0_i32_0 = arith.constant 0 : i32
    return %arg0, %c0_i32 : i32, i32
  }
}

</mosaic_0001>

<bundles_post_ra>
// kernel: node_classifier_forward.1
= control target key start
LH: loop header
LB: loop body
LE: loop exit
PB: predicated region body
PF: predicated region fallthrough
CT: control target
= control target key end

     0   :  { %s315_s0 = inlined_call_operand.vmem [shape: bf16[8,32], index: 0, kind: input, shape index: {}]   ;;  %s316_s1 = inlined_call_operand.vmem [shape: bf16[32,128], index: 1, kind: input, shape index: {}]   ;;  %s317_s2 = inlined_call_operand.vmem [shape: f32[1,128], index: 2, kind: input, shape index: {}]   ;;  %s318_s3 = inlined_call_operand.vmem [shape: bf16[128,128], index: 3, kind: input, shape index: {}]   ;;  %s319_s4 = inlined_call_operand.vmem [shape: f32[1,128], index: 4, kind: input, shape index: {}]   ;;  %s320_s5 = inlined_call_operand.hbm [shape: f32[8,128], index: 5, kind: output, shape index: {}]  }
   0x1   :  { %v204_v0 = vld [vmem:[%s316_s1 + $0x8] sm:$0xff]  ;;  %v212_v1 = vld [vmem:[%s318_s3 + $0x38] sm:$0xff]  ;;  %v203_v2 = vld [vmem:[%s316_s1] sm:$0xff] }
   0x2   :  { %53 = vmatpush.bf16.msra.mxu0 %v204_v0  ;;  %132 = vmatpush.bf16.msra.mxu1 %v212_v1  ;;  %v211_v3 = vld [vmem:[%s318_s3 + $0x30] sm:$0xff] }
   0x3   :  { %10 = vsyncpa [#allocation3], 0  ;;  %v22_v4 = vld [vmem:[%s315_s0] sm:$0xf]  ;;  %vm43_vm0 = vcmask 261120   ;;  %v210_v5 = vld [vmem:[%s318_s3 + $0x28] sm:$0xff] }
   0x4   :  { %v209_v6 = vld [vmem:[%s318_s3 + $0x20] sm:$0xff]  ;;  %v208_v7 = vld [vmem:[%s318_s3 + $0x18] sm:$0xff]  ;;  %v207_v8 = vld [vmem:[%s318_s3 + $0x10] sm:$0xff]  ;;  %s242_s17 = smov [#allocation2]   ;;  %s153_s20 = sshll.u32 %s320_s5, 4  ;;  %s154_s20 = int_to_ptr.hbm [resolvable:$true] %s153_s20 }
   0x5   :  { %v206_v9 = vld [vmem:[%s318_s3 + $0x8] sm:$0xff]  ;;  %v205_v10 = vld [vmem:[%s318_s3] sm:$0xff]  ;;  %s151_s18 = sshll.u32 %s242_s17, 4  ;;  %s152_s18 = int_to_ptr.vmem [resolvable:$true] %s151_s18 }
   0x6   :  { %54 = vmatpush.bf16.msra.mxu0 %v203_v2  ;;  %133 = vmatpush.bf16.msra.mxu1 %v211_v3  ;;  %v214_v11 = vld [vmem:[%s317_s2] ss:$0 sm:$0xff] }
   0x7   :  { %v215_v18 = vld [vmem:[%s319_s4] ss:$0 sm:$0xff] }
   0x9   :  { %170 = vmatmul.msk.bf16.vlgmr.msra.gmra.mxu0 %vm43_vm0, %v22_v4 }
   0xa   :  { %134 = vmatpush.bf16.msra.mxu1 %v210_v5 }
   0xe   :  { %135 = vmatpush.bf16.msra.mxu1 %v209_v6 }
  0x12   :  { %136 = vmatpush.bf16.msra.mxu1 %v208_v7 }
  0x16   :  { %137 = vmatpush.bf16.msra.mxu1 %v207_v8 }
  0x1a   :  { %138 = vmatpush.bf16.msra.mxu1 %v206_v9 }
  0x1e   :  { %139 = vmatpush.bf16.msra.mxu1 %v205_v10 }
  0x86   :  { %v56_v12 = vpop.f32.mrf.mxu0 }
  0x87   :  { %v57_v13 = vadd.f32 %v214_v11, %v56_v12 }
  0x89   :  { %v61_v14 = vmul.f32 0.01, %v57_v13  ;;  %vm60_vm1 = vcmp.gt.f32.partialorder %v57_v13, 0.0 }
  0x8b   :  { %v62_v15 = vsel %vm60_vm1, %v57_v13, %v61_v14 }
  0x8c   :  { %v63_v16 = vpack.c.bf16 %v62_v15, %v62_v15 }
  0x8e   :  { %v58_v17 = vpop.f32.mrf.mxu0  ;;  %140 = vmatmul.bf16.vlgmr.msra.gmra.mxu1 %v63_v16 }
 0x10b   :  { %v141_v19 = vpop.f32.mrf.mxu1 }
 0x10c   :  { %v142_v20 = vadd.f32 %v215_v18, %v141_v19 }
 0x10e   :  { %145 = vst [vmem:[#allocation2] sm:$0xff] %v142_v20 }
 0x10f   :  { %156 = dma.vmem_to_hbm [thread:$0]  %s152_s18, 128, %s154_s20, [#allocation3]  }
 0x113   :  { %v143_v21 = vpop.f32.mrf.mxu1 }
 0x114   :  { %240 = dma.done.wait [#allocation3], 128  }
 0x115   :  { %241 = vsyncadd [#allocation3], 4294967168 }
 0x116   :  { %161 = vsyncpa [#allocation3], 1 }

</bundles_post_ra>
